<compile_context>
chip_gen: v7x
topology: tpu7x:2x2x1
jax: 0.10.0
libtpu: 0.0.40
codegen_flags: <defaults>
</compile_context>

<pallas_src>
import functools
import math

import jax
import jax.numpy as jnp
from jax import lax
from jax.experimental import pallas as pl
from jax.experimental.pallas import tpu as pltpu


_LN_EPS = 1e-12


def _vmem_limit_bytes():
    # ~75% of physical VMEM: 48 MiB on v7x (64 MiB phys), 96 MiB on v5e/v6e (128 MiB).
    try:
        return int(pltpu.get_tpu_info().vmem_capacity_bytes * 3 // 4)
    except Exception:
        return 48 * 1024 * 1024


_VMEM_LIMIT = _vmem_limit_bytes()


def _pick_tile(dim, target, align):
    """Largest tile <= target that divides `dim` and respects TPU tiling alignment.
    Falls back to the full dimension (always a legal block) when needed."""
    if dim <= target:
        return dim
    t = (target // align) * align
    while t >= align:
        if dim % t == 0:
            return t
        t -= align
    return dim


def _heads_per_group(num_heads, head_dim):
    """Smallest head count per attention grid step whose width is >= 128 lanes."""
    for cand in range(1, num_heads + 1):
        if num_heads % cand == 0 and cand * head_dim >= 128:
            return cand
    return num_heads


# ----------------------------------------------------------------------------
# Pallas kernels
# ----------------------------------------------------------------------------
def _gelu(y):
    # TODO(synk): PyTorch/HF BERT default is exact erf-GELU; tanh approximation
    # is used here for a Mosaic-safe transcendental (differences ~1e-3).
    c = math.sqrt(2.0 / math.pi)
    return 0.5 * y * (1.0 + jnp.tanh(c * (y + 0.044715 * y * y * y)))


# ---- y = act(x @ w + b) ------------------------------------------------------
def _linear_single_kernel(x_ref, w_ref, b_ref, o_ref, *, activation):
    # Single K pass: no accumulator scratch, no read-modify-write.
    y = jnp.dot(x_ref[...], w_ref[...], preferred_element_type=jnp.float32)
    y = y + b_ref[...]
    if activation == "gelu":
        y = _gelu(y)                      # f32 epilogue (v5e EUP/VPU are f32-only)
    o_ref[...] = y.astype(o_ref.dtype)


def _linear_acc_kernel(x_ref, w_ref, b_ref, o_ref, acc_ref, *, activation):
    k = pl.program_id(2)

    @pl.when(k == 0)
    def _():
        acc_ref[...] = jnp.zeros_like(acc_ref)

    acc_ref[...] += jnp.dot(x_ref[...], w_ref[...],
                            preferred_element_type=jnp.float32)

    @pl.when(k == pl.num_programs(2) - 1)
    def _():
        y = acc_ref[...] + b_ref[...]
        if activation == "gelu":
            y = _gelu(y)
        o_ref[...] = y.astype(o_ref.dtype)


def linear(x, w, b, *, activation=None, out_dtype=jnp.bfloat16,
           tm=512, tn=1024, tk=4096):
    """y = act(x @ w + b). Expects w already bf16 and b already (1, N) f32
    (prepared once in prepare_params). Tiled, pipelined, bf16 MXU / f32 acc."""
    M, K = x.shape
    N = w.shape[1]
    tm = _pick_tile(M, tm, 16)
    tn = _pick_tile(N, tn, 128)
    tk = _pick_tile(K, tk, 128)
    nk = K // tk
    if nk == 1:
        kern = functools.partial(_linear_single_kernel, activation=activation)
        scratch = []
    else:
        kern = functools.partial(_linear_acc_kernel, activation=activation)
        scratch = [pltpu.VMEM((tm, tn), jnp.float32)]
    return pl.pallas_call(
        kern,
        out_shape=jax.ShapeDtypeStruct((M, N), out_dtype),
        grid=(M // tm, N // tn, nk),
        in_specs=[
            pl.BlockSpec((tm, tk), lambda i, j, k: (i, k)),
            pl.BlockSpec((tk, tn), lambda i, j, k: (k, j)),
            pl.BlockSpec((1, tn), lambda i, j, k: (0, j)),
        ],
        out_specs=pl.BlockSpec((tm, tn), lambda i, j, k: (i, j)),
        scratch_shapes=scratch,
        compiler_params=pltpu.CompilerParams(
            dimension_semantics=("parallel", "parallel", "arbitrary"),
            vmem_limit_bytes=_VMEM_LIMIT),
    )(x.astype(jnp.bfloat16), w, b)


# ---- LayerNorm(x @ w + b + residual) ----------------------------------------
def _linear_res_ln_single_kernel(x_ref, w_ref, b_ref, r_ref, g_ref, bb_ref, o_ref):
    y = jnp.dot(x_ref[...], w_ref[...], preferred_element_type=jnp.float32)
    y = y + b_ref[...] + r_ref[...].astype(jnp.float32)
    mu = jnp.mean(y, axis=-1, keepdims=True)
    var = jnp.mean(jnp.square(y - mu), axis=-1, keepdims=True)
    o_ref[...] = ((y - mu) * lax.rsqrt(var + _LN_EPS) * g_ref[...]
                  + bb_ref[...]).astype(o_ref.dtype)


def _linear_res_ln_acc_kernel(x_ref, w_ref, b_ref, r_ref, g_ref, bb_ref,
                              o_ref, acc_ref):
    k = pl.program_id(2)

    @pl.when(k == 0)
    def _():
        acc_ref[...] = jnp.zeros_like(acc_ref)

    acc_ref[...] += jnp.dot(x_ref[...], w_ref[...],
                            preferred_element_type=jnp.float32)

    @pl.when(k == pl.num_programs(2) - 1)
    def _():
        y = acc_ref[...] + b_ref[...] + r_ref[...].astype(jnp.float32)
        mu = jnp.mean(y, axis=-1, keepdims=True)
        var = jnp.mean(jnp.square(y - mu), axis=-1, keepdims=True)
        o_ref[...] = ((y - mu) * lax.rsqrt(var + _LN_EPS) * g_ref[...]
                      + bb_ref[...]).astype(o_ref.dtype)


def linear_residual_layernorm(x, w, b, residual, gamma, beta, *,
                              out_dtype=jnp.bfloat16, tm=512, tk=4096):
    """LayerNorm(x @ w + b + residual): bias + residual + LN fused into the matmul
    epilogue.  Keeps the full output row per tile (tn == N) so row stats are exact."""
    M, K = x.shape
    N = w.shape[1]
    tm = _pick_tile(M, tm, 16)
    tk = _pick_tile(K, tk, 128)
    nk = K // tk
    if nk == 1:
        kern = _linear_res_ln_single_kernel
        scratch = []
    else:
        kern = _linear_res_ln_acc_kernel
        scratch = [pltpu.VMEM((tm, N), jnp.float32)]
    return pl.pallas_call(
        kern,
        out_shape=jax.ShapeDtypeStruct((M, N), out_dtype),
        grid=(M // tm, 1, nk),
        in_specs=[
            pl.BlockSpec((tm, tk), lambda i, j, k: (i, k)),
            pl.BlockSpec((tk, N), lambda i, j, k: (k, 0)),
            pl.BlockSpec((1, N), lambda i, j, k: (0, 0)),
            pl.BlockSpec((tm, N), lambda i, j, k: (i, 0)),
            pl.BlockSpec((1, N), lambda i, j, k: (0, 0)),
            pl.BlockSpec((1, N), lambda i, j, k: (0, 0)),
        ],
        out_specs=pl.BlockSpec((tm, N), lambda i, j, k: (i, 0)),
        scratch_shapes=scratch,
        compiler_params=pltpu.CompilerParams(
            dimension_semantics=("parallel", "parallel", "arbitrary"),
            vmem_limit_bytes=_VMEM_LIMIT),
    )(x.astype(jnp.bfloat16), w, b, residual, gamma, beta)


# ---- embedding sum + LayerNorm ----------------------------------------------
def _embed_ln_kernel(we_ref, te_ref, pe_ref, g_ref, b_ref, o_ref):
    x = (we_ref[0].astype(jnp.float32) + te_ref[0].astype(jnp.float32)
         + pe_ref[...].astype(jnp.float32))
    mu = jnp.mean(x, axis=-1, keepdims=True)
    var = jnp.mean(jnp.square(x - mu), axis=-1, keepdims=True)
    o_ref[0] = ((x - mu) * lax.rsqrt(var + _LN_EPS) * g_ref[...]
                + b_ref[...]).astype(o_ref.dtype)


def embed_layernorm(we, te, pe, gamma, beta, *, out_dtype=jnp.bfloat16, ts=256):
    """LayerNorm(word_emb + pos_emb + type_emb) with the sum fused in-kernel
    (no (B*S, H) f32 intermediate in HBM; positions broadcast via the index_map)."""
    B, S, H = we.shape
    ts = _pick_tile(S, ts, 16)
    return pl.pallas_call(
        _embed_ln_kernel,
        out_shape=jax.ShapeDtypeStruct((B, S, H), out_dtype),
        grid=(B, S // ts),
        in_specs=[
            pl.BlockSpec((1, ts, H), lambda b, s: (b, s, 0)),
            pl.BlockSpec((1, ts, H), lambda b, s: (b, s, 0)),
            pl.BlockSpec((ts, H), lambda b, s: (s, 0)),
            pl.BlockSpec((1, H), lambda b, s: (0, 0)),
            pl.BlockSpec((1, H), lambda b, s: (0, 0)),
        ],
        out_specs=pl.BlockSpec((1, ts, H), lambda b, s: (b, s, 0)),
        compiler_params=pltpu.CompilerParams(
            dimension_semantics=("parallel", "parallel"),
            vmem_limit_bytes=_VMEM_LIMIT),
    )(we, te, pe, gamma, beta)


# ---- multi-head self attention ----------------------------------------------
def _attention_kernel(qkv_ref, m_ref, o_ref, *, heads_per_group, head_dim, scale):
    # qkv_ref block: (1, S, 3*gw) holding this head-group's [Q | K | V] columns.
    qkv = qkv_ref[0]                  # (S, 3*gw)
    add_mask = m_ref[0]               # (1, S) additive mask, broadcast over queries
    gw = heads_per_group * head_dim
    # TODO(synk): for S >= ~1024 switch to flash-style query tiling with an online
    # softmax instead of materializing the full per-head (S, S) score matrix.
    for hh in range(heads_per_group):     # static, unrolled per-head loop
        q = qkv[:, hh * head_dim:(hh + 1) * head_dim]
        k = qkv[:, gw + hh * head_dim:gw + (hh + 1) * head_dim]
        v = qkv[:, 2 * gw + hh * head_dim:2 * gw + (hh + 1) * head_dim]
        s = lax.dot_general(q, k, (((1,), (1,)), ((), ())),
                            preferred_element_type=jnp.float32) * scale
        s = s + add_mask
        s = s - jnp.max(s, axis=-1, keepdims=True)
        p = jnp.exp(s)
        inv_l = pl.reciprocal(jnp.sum(p, axis=-1, keepdims=True), approx=True)
        ctx = jnp.dot(p.astype(v.dtype), v, preferred_element_type=jnp.float32)
        # write each head directly into its static column slice -> bounded live
        # ranges, no concatenate; the (1, S, gw) HBM writeback stays lane-dense.
        o_ref[0, :, hh * head_dim:(hh + 1) * head_dim] = (ctx * inv_l).astype(o_ref.dtype)


def attention(qkv, add_mask, num_heads, heads_per_group):
    """qkv: (B, S, 3H) fused projections, columns ordered by head group
    ([Qg|Kg|Vg] per group, built once in prepare_params); add_mask: (B, 1, S)."""
    B, S, three_h = qkv.shape
    H = three_h // 3
    dh = H // num_heads
    gw = heads_per_group * dh
    n_groups = num_heads // heads_per_group
    kern = functools.partial(_attention_kernel, heads_per_group=heads_per_group,
                             head_dim=dh, scale=1.0 / math.sqrt(dh))
    return pl.pallas_call(
        kern,
        out_shape=jax.ShapeDtypeStruct((B, S, H), jnp.bfloat16),
        grid=(B, n_groups),
        in_specs=[
            pl.BlockSpec((1, S, 3 * gw), lambda b, g: (b, 0, g)),
            pl.BlockSpec((1, 1, S), lambda b, g: (b, 0, 0)),
        ],
        out_specs=pl.BlockSpec((1, S, gw), lambda b, g: (b, 0, g)),
        compiler_params=pltpu.CompilerParams(
            dimension_semantics=("parallel", "parallel"),
            vmem_limit_bytes=_VMEM_LIMIT),
    )(qkv, add_mask)


# ---- CRF log-likelihood -------------------------------------------------------
def _crf_kernel(e_ref, oh_ref, loh_ref, m_ref, st_ref, en_ref, tr_ref, o_ref):
    e = e_ref[0]           # (S, L) emissions (f32)
    oh = oh_ref[0]         # (S, L) one-hot gold tags
    loh = loh_ref[0]       # (1, L) one-hot of last valid tag
    msk = m_ref[0]         # (S, 1) float mask (mask[:,0] == 1 required, as in torchcrf)
    start = st_ref[...]    # (1, L)
    end = en_ref[...]      # (1, L)
    trans = tr_ref[...]    # (L, L)
    S, L = e.shape

    # ----- numerator: score of the gold tag path -----
    first = jnp.sum(start * oh[0:1, :], keepdims=True)                      # (1,1)
    emit = jnp.sum(e * oh * msk, keepdims=True)                             # (1,1)
    trans_rows = jnp.dot(oh, trans, preferred_element_type=jnp.float32)     # row t = trans[tag_t, :]
    tsc = jnp.sum(trans_rows[:-1, :] * oh[1:, :] * msk[1:, :], keepdims=True)
    last = jnp.sum(end * loh, keepdims=True)
    numerator = first + emit + tsc + last                                   # (1,1)

    # ----- denominator: log partition via forward algorithm -----
    eye = (lax.broadcasted_iota(jnp.int32, (L, L), 0)
           == lax.broadcasted_iota(jnp.int32, (L, L), 1)).astype(jnp.float32)
    alpha = start + e[0:1, :]                                               # (1, L)

    def body(t, alpha):
        # row -> column copy of alpha without a relayout transpose
        alpha_col = jnp.sum(eye * alpha, axis=1, keepdims=True)             # (L, 1)
        scores = alpha_col + trans                                          # [i, j] = alpha_i + T_ij
        m = jnp.max(scores, axis=0, keepdims=True)                          # (1, L)
        lse = m + jnp.log(jnp.sum(jnp.exp(scores - m), axis=0, keepdims=True))
        e_t = e_ref[0, pl.ds(t, 1), :]                                      # (1, L)
        nxt = lse + e_t
        m_t = m_ref[0, pl.ds(t, 1), :]                                      # (1, 1)
        return jnp.where(m_t > 0.0, nxt, alpha)

    # partial unroll: keeps LLO scheduling visibility without S-1 body copies
    alpha = lax.fori_loop(1, S, body, alpha, unroll=8)
    final = alpha + end                                                     # (1, L)
    fmax = jnp.max(final, keepdims=True)                                    # (1, 1)
    denom = fmax + jnp.log(jnp.sum(jnp.exp(final - fmax), keepdims=True))

    o_ref[0] = numerator - denom                                            # per-sequence log-likelihood


def crf_log_likelihood(emissions, tags_onehot, last_onehot, mask_f, start, end, trans):
    B, S, L = emissions.shape
    llh = pl.pallas_call(
        _crf_kernel,
        out_shape=jax.ShapeDtypeStruct((B, 1, 1), jnp.float32),
        grid=(B,),
        in_specs=[
            pl.BlockSpec((1, S, L), lambda b: (b, 0, 0)),  # emissions
            pl.BlockSpec((1, S, L), lambda b: (b, 0, 0)),  # gold-tag one-hot
            pl.BlockSpec((1, 1, L), lambda b: (b, 0, 0)),  # last-tag one-hot
            pl.BlockSpec((1, S, 1), lambda b: (b, 0, 0)),  # float mask
            pl.BlockSpec((1, L), lambda b: (0, 0)),        # start transitions
            pl.BlockSpec((1, L), lambda b: (0, 0)),        # end transitions
            pl.BlockSpec((L, L), lambda b: (0, 0)),        # transitions
        ],
        out_specs=pl.BlockSpec((1, 1, 1), lambda b: (b, 0, 0)),
        compiler_params=pltpu.CompilerParams(dimension_semantics=("parallel",)),
    )(emissions, tags_onehot, last_onehot, mask_f, start, end, trans)
    return jnp.sum(llh)   # torchcrf default reduction='sum'


# ----------------------------------------------------------------------------
# Parameters
# ----------------------------------------------------------------------------
def init_params(key, cfg):
    H, I, L = cfg["hidden_size"], cfg["intermediate_size"], cfg["num_labels"]

    def nrm(k, shape):
        return 0.02 * jax.random.normal(k, shape, jnp.float32)

    keys = iter(jax.random.split(key, 256))
    params = {
        "word_emb": nrm(next(keys), (cfg["vocab_size"], H)),
        "pos_emb": nrm(next(keys), (cfg["max_position_embeddings"], H)),
        "type_emb": nrm(next(keys), (cfg["type_vocab_size"], H)),
        "emb_ln_g": jnp.ones((H,), jnp.float32),
        "emb_ln_b": jnp.zeros((H,), jnp.float32),
        "layers": [],
        "cls_w": nrm(next(keys), (H, L)),
        "cls_b": jnp.zeros((L,), jnp.float32),
        "crf_start": jax.random.uniform(next(keys), (L,), jnp.float32, -0.1, 0.1),
        "crf_end": jax.random.uniform(next(keys), (L,), jnp.float32, -0.1, 0.1),
        "crf_trans": jax.random.uniform(next(keys), (L, L), jnp.float32, -0.1, 0.1),
    }
    for _ in range(cfg["num_layers"]):
        params["layers"].append({
            "q_w": nrm(next(keys), (H, H)), "q_b": jnp.zeros((H,), jnp.float32),
            "k_w": nrm(next(keys), (H, H)), "k_b": jnp.zeros((H,), jnp.float32),
            "v_w": nrm(next(keys), (H, H)), "v_b": jnp.zeros((H,), jnp.float32),
            "ao_w": nrm(next(keys), (H, H)), "ao_b": jnp.zeros((H,), jnp.float32),
            "attn_ln_g": jnp.ones((H,), jnp.float32),
            "attn_ln_b": jnp.zeros((H,), jnp.float32),
            "i_w": nrm(next(keys), (H, I)), "i_b": jnp.zeros((I,), jnp.float32),
            "o_w": nrm(next(keys), (I, H)), "o_b": jnp.zeros((H,), jnp.float32),
            "out_ln_g": jnp.ones((H,), jnp.float32),
            "out_ln_b": jnp.zeros((H,), jnp.float32),
        })
    return params


def prepare_params(params, cfg):
    """One-time weight prep: fused head-group-ordered QKV, bf16 weight casts,
    (1, N) f32 biases / LN params.  Removes all per-forward weight HBM traffic."""
    H, I, L = cfg["hidden_size"], cfg["intermediate_size"], cfg["num_labels"]
    nH = cfg["num_heads"]
    dh = H // nH
    hg = _heads_per_group(nH, dh)
    gw = hg * dh
    n_groups = nH // hg

    def bf16(x):
        return x.astype(jnp.bfloat16)

    def row(x):
        return x.reshape(1, -1).astype(jnp.float32)

    fast = {
        "word_emb": params["word_emb"],
        "pos_emb": params["pos_emb"],
        "type_emb": params["type_emb"],
        "emb_ln_g": row(params["emb_ln_g"]),
        "emb_ln_b": row(params["emb_ln_b"]),
        "layers": [],
        "cls_w": bf16(params["cls_w"]),
        "cls_b": row(params["cls_b"]),
        "crf_start": params["crf_start"].reshape(1, L),
        "crf_end": params["crf_end"].reshape(1, L),
        "crf_trans": params["crf_trans"],
    }
    for layer in params["layers"]:
        w_groups, b_groups = [], []
        for g in range(n_groups):
            cs, ce = g * gw, (g + 1) * gw
            w_groups += [layer["q_w"][:, cs:ce], layer["k_w"][:, cs:ce],
                         layer["v_w"][:, cs:ce]]
            b_groups += [layer["q_b"][cs:ce], layer["k_b"][cs:ce], layer["v_b"][cs:ce]]
        fast["layers"].append({
            "qkv_w": bf16(jnp.concatenate(w_groups, axis=1)),
            "qkv_b": row(jnp.concatenate(b_groups)),
            "ao_w": bf16(layer["ao_w"]), "ao_b": row(layer["ao_b"]),
            "attn_ln_g": row(layer["attn_ln_g"]), "attn_ln_b": row(layer["attn_ln_b"]),
            "i_w": bf16(layer["i_w"]), "i_b": row(layer["i_b"]),
            "o_w": bf16(layer["o_w"]), "o_b": row(layer["o_b"]),
            "out_ln_g": row(layer["out_ln_g"]), "out_ln_b": row(layer["out_ln_b"]),
        })
    return fast


# ----------------------------------------------------------------------------
# Model forward (glue around the kernels)
# ----------------------------------------------------------------------------
def bert_crf_forward(params, input_ids, token_type_ids, attention_mask, labels, cfg):
    B, S = input_ids.shape
    H, nH, L = cfg["hidden_size"], cfg["num_heads"], cfg["num_labels"]
    M = B * S
    hg = _heads_per_group(nH, H // nH)

    # ---- embeddings: real gathers; sum + LayerNorm fused in one kernel
    we = jnp.take(params["word_emb"], input_ids.reshape(M), axis=0).reshape(B, S, H)
    te = jnp.take(params["type_emb"], token_type_ids.reshape(M), axis=0).reshape(B, S, H)
    pe = params["pos_emb"][:S]
    h = embed_layernorm(we, te, pe, params["emb_ln_g"],
                        params["emb_ln_b"]).reshape(M, H)      # (M, H) bf16
    # hidden_dropout_prob dropout -> identity (deterministic inference)

    amask = attention_mask.astype(jnp.float32)                 # (B, S)
    add_mask = ((1.0 - amask) * -10000.0).reshape(B, 1, S)     # no per-head broadcast

    for layer in params["layers"]:
        qkv = linear(h, layer["qkv_w"], layer["qkv_b"])                      # (M, 3H) bf16
        ctx = attention(qkv.reshape(B, S, 3 * H), add_mask, nH, hg).reshape(M, H)
        # attn-out projection with bias+residual+LayerNorm fused in the epilogue
        h = linear_residual_layernorm(ctx, layer["ao_w"], layer["ao_b"], h,
                                      layer["attn_ln_g"], layer["attn_ln_b"])
        inter = linear(h, layer["i_w"], layer["i_b"], activation="gelu")
        h = linear_residual_layernorm(inter, layer["o_w"], layer["o_b"], h,
                                      layer["out_ln_g"], layer["out_ln_b"])

    # classifier head (dropout before it is identity at inference); logits f32 for CRF
    logits = linear(h, params["cls_w"], params["cls_b"],
                    out_dtype=jnp.float32).reshape(B, S, L)

    outputs = (logits,)
    if labels is not None:
        tags_oh = jax.nn.one_hot(labels, L, dtype=jnp.float32)        # (B, S, L)
        seq_len = jnp.sum(amask, axis=1).astype(jnp.int32)            # (B,)
        last_idx = jnp.maximum(seq_len - 1, 0)
        last_oh = jnp.take_along_axis(tags_oh, last_idx[:, None, None], axis=1)  # (B, 1, L)
        llh = crf_log_likelihood(logits, tags_oh, last_oh, amask[:, :, None],
                                 params["crf_start"], params["crf_end"],
                                 params["crf_trans"])
        outputs = (-1.0 * llh,) + outputs
    return outputs


# ----------------------------------------------------------------------------
if __name__ == "__main__":
    cfg = dict(
        vocab_size=50,
        hidden_size=32,
        num_heads=2,
        num_layers=2,
        intermediate_size=64,
        max_position_embeddings=16,
        type_vocab_size=2,
        num_labels=5,
        hidden_dropout_prob=0.1,
    )
    B, S = 2, 8

    key = jax.random.PRNGKey(0)
    pkey, k1, k2 = jax.random.split(key, 3)
    params = prepare_params(init_params(pkey, cfg), cfg)

    input_ids = jax.random.randint(k1, (B, S), 0, cfg["vocab_size"], dtype=jnp.int32)
    token_type_ids = jnp.zeros((B, S), jnp.int32)
    lens = jnp.array([S, 5], jnp.int32)   # second sequence padded (mask[:,0]=1 as CRF requires)
    attention_mask = (jnp.arange(S)[None, :] < lens[:, None]).astype(jnp.int32)
    labels = jax.random.randint(k2, (B, S), 0, cfg["num_labels"], dtype=jnp.int32)

    loss, logits = bert_crf_forward(params, input_ids, token_type_ids,
                                    attention_mask, labels, cfg)
    jax.block_until_ready((loss, logits))
    assert logits.shape == (B, S, cfg["num_labels"])
    assert loss.shape == ()
    print("KERNEL_OK")
</pallas_src>

<mosaic_0001>
module attributes {stable_mosaic.version = 11 : i64} {
  func.func @_embed_ln_kernel(%arg0: i32, %arg1: i32, %arg2: memref<1x8x32xf32, #tpu.memory_space<vmem>>, %arg3: memref<1x8x32xf32, #tpu.memory_space<vmem>>, %arg4: memref<8x32xf32, #tpu.memory_space<vmem>>, %arg5: memref<1x32xf32, #tpu.memory_space<vmem>>, %arg6: memref<1x32xf32, #tpu.memory_space<vmem>>, %arg7: memref<1x8x32xbf16, #tpu.memory_space<vmem>>) attributes {dimension_semantics = [#tpu.dimension_semantics<parallel>, #tpu.dimension_semantics<parallel>], iteration_bounds = array<i64: 2, 1>, scalar_prefetch = 0 : i64, scratch_operands = 0 : i64, tpu.core_type = #tpu.core_type<tc>, window_params = [{transform_indices = @transform_0, window_bounds = array<i64: 1, 8, 32>}, {transform_indices = @transform_1, window_bounds = array<i64: 1, 8, 32>}, {transform_indices = @transform_2, window_bounds = array<i64: 8, 32>}, {pipeline_mode = #tpu.pipeline_mode<synchronous>, transform_indices = @transform_3, window_bounds = array<i64: 1, 32>}, {pipeline_mode = #tpu.pipeline_mode<synchronous>, transform_indices = @transform_4, window_bounds = array<i64: 1, 32>}, {transform_indices = @transform_5, window_bounds = array<i64: 1, 8, 32>}]} {
    %c0 = arith.constant 0 : index
    %c0_0 = arith.constant 0 : index
    %c0_1 = arith.constant 0 : index
    %0 = vector.load %arg2[%c0, %c0_0, %c0_1] : memref<1x8x32xf32, #tpu.memory_space<vmem>>, vector<1x8x32xf32>
    %1 = vector.shape_cast %0 : vector<1x8x32xf32> to vector<8x32xf32>
    %c0_2 = arith.constant 0 : index
    %c0_3 = arith.constant 0 : index
    %c0_4 = arith.constant 0 : index
    %2 = vector.load %arg3[%c0_2, %c0_3, %c0_4] : memref<1x8x32xf32, #tpu.memory_space<vmem>>, vector<1x8x32xf32>
    %3 = vector.shape_cast %2 : vector<1x8x32xf32> to vector<8x32xf32>
    %4 = arith.addf %1, %3 : vector<8x32xf32>
    %c0_5 = arith.constant 0 : index
    %c0_6 = arith.constant 0 : index
    %5 = vector.load %arg4[%c0_5, %c0_6] : memref<8x32xf32, #tpu.memory_space<vmem>>, vector<8x32xf32>
    %6 = arith.addf %4, %5 : vector<8x32xf32>
    %cst = arith.constant dense<0.000000e+00> : vector<8xf32>
    %7 = vector.multi_reduction <add>, %6, %cst [1] : vector<8x32xf32> to vector<8xf32>
    %8 = vector.shape_cast %7 : vector<8xf32> to vector<8x1xf32>
    %cst_7 = arith.constant 3.200000e+01 : f32
    %9 = vector.broadcast %cst_7 : f32 to vector<8x1xf32>
    %10 = arith.divf %8, %9 : vector<8x1xf32>
    %11 = vector.broadcast %10 : vector<8x1xf32> to vector<8x32xf32>
    %12 = arith.subf %6, %11 : vector<8x32xf32>
    %13 = arith.mulf %12, %12 : vector<8x32xf32>
    %cst_8 = arith.constant dense<0.000000e+00> : vector<8xf32>
    %14 = vector.multi_reduction <add>, %13, %cst_8 [1] : vector<8x32xf32> to vector<8xf32>
    %15 = vector.shape_cast %14 : vector<8xf32> to vector<8x1xf32>
    %cst_9 = arith.constant 3.200000e+01 : f32
    %16 = vector.broadcast %cst_9 : f32 to vector<8x1xf32>
    %17 = arith.divf %15, %16 : vector<8x1xf32>
    %18 = vector.broadcast %10 : vector<8x1xf32> to vector<8x32xf32>
    %19 = arith.subf %6, %18 : vector<8x32xf32>
    %cst_10 = arith.constant 9.99999996E-13 : f32
    %20 = vector.broadcast %cst_10 : f32 to vector<8x1xf32>
    %21 = arith.addf %17, %20 : vector<8x1xf32>
    %22 = math.rsqrt %21 : vector<8x1xf32>
    %23 = vector.broadcast %22 : vector<8x1xf32> to vector<8x32xf32>
    %24 = arith.mulf %19, %23 : vector<8x32xf32>
    %c0_11 = arith.constant 0 : index
    %c0_12 = arith.constant 0 : index
    %25 = vector.load %arg5[%c0_11, %c0_12] : memref<1x32xf32, #tpu.memory_space<vmem>>, vector<1x32xf32>
    %26 = vector.broadcast %25 : vector<1x32xf32> to vector<8x32xf32>
    %27 = arith.mulf %24, %26 : vector<8x32xf32>
    %c0_13 = arith.constant 0 : index
    %c0_14 = arith.constant 0 : index
    %28 = vector.load %arg6[%c0_13, %c0_14] : memref<1x32xf32, #tpu.memory_space<vmem>>, vector<1x32xf32>
    %29 = vector.broadcast %28 : vector<1x32xf32> to vector<8x32xf32>
    %30 = arith.addf %27, %29 : vector<8x32xf32>
    %31 = arith.truncf %30 : vector<8x32xf32> to vector<8x32xbf16>
    %c0_15 = arith.constant 0 : index
    %c0_16 = arith.constant 0 : index
    %c0_17 = arith.constant 0 : index
    %32 = vector.load %arg7[%c0_15, %c0_16, %c0_17] : memref<1x8x32xbf16, #tpu.memory_space<vmem>>, vector<1x8x32xbf16>
    %33 = vector.shape_cast %32 : vector<1x8x32xbf16> to vector<8x32xbf16>
    %34 = vector.shape_cast %31 : vector<8x32xbf16> to vector<1x8x32xbf16>
    tpu.vector_store %arg7[%c0_15, %c0_16, %c0_17], %34 {strides = array<i32>} : memref<1x8x32xbf16, #tpu.memory_space<vmem>>, vector<1x8x32xbf16>,
    return
  }
  func.func @transform_0(%arg0: i32, %arg1: i32) -> (i32, i32, i32) {
    %c0_i32 = arith.constant 0 : i32
    %c0_i32_0 = arith.constant 0 : i32
    return %arg0, %arg1, %c0_i32 : i32, i32, i32
  }
  func.func @transform_1(%arg0: i32, %arg1: i32) -> (i32, i32, i32) {
    %c0_i32 = arith.constant 0 : i32
    %c0_i32_0 = arith.constant 0 : i32
    return %arg0, %arg1, %c0_i32 : i32, i32, i32
  }
  func.func @transform_2(%arg0: i32, %arg1: i32) -> (i32, i32) {
    %c0_i32 = arith.constant 0 : i32
    %c0_i32_0 = arith.constant 0 : i32
    return %arg1, %c0_i32 : i32, i32
  }
  func.func @transform_3(%arg0: i32, %arg1: i32) -> (i32, i32) {
    %c0_i32 = arith.constant 0 : i32
    %c0_i32_0 = arith.constant 0 : i32
    %c0_i32_1 = arith.constant 0 : i32
    return %c0_i32, %c0_i32_0 : i32, i32
  }
  func.func @transform_4(%arg0: i32, %arg1: i32) -> (i32, i32) {
    %c0_i32 = arith.constant 0 : i32
    %c0_i32_0 = arith.constant 0 : i32
    %c0_i32_1 = arith.constant 0 : i32
    return %c0_i32, %c0_i32_0 : i32, i32
  }
  func.func @transform_5(%arg0: i32, %arg1: i32) -> (i32, i32, i32) {
    %c0_i32 = arith.constant 0 : i32
    %c0_i32_0 = arith.constant 0 : i32
    return %arg0, %arg1, %c0_i32 : i32, i32, i32
  }
}

</mosaic_0001>

<bundles_post_ra>
// kernel: tpu_custom_call.1
= control target key start
LH: loop header
LB: loop body
LE: loop exit
PB: predicated region body
PF: predicated region fallthrough
CT: control target
= control target key end

     0   :  { %s1054_s0 = inlined_call_operand.hbm [shape: f32[2,8,32], index: 0, kind: input, shape index: {}]   ;;  %s1055_s1 = inlined_call_operand.hbm [shape: f32[2,8,32], index: 1, kind: input, shape index: {}]   ;;  %s1056_s2 = inlined_call_operand.hbm [shape: f32[8,32], index: 2, kind: input, shape index: {}]   ;;  %s1057_s3 = inlined_call_operand.vmem [shape: f32[1,32], index: 3, kind: input, shape index: {}]   ;;  %s1058_s4 = inlined_call_operand.vmem [shape: f32[1,32], index: 4, kind: input, shape index: {}]   ;;  %s1059_s5 = inlined_call_operand.hbm [shape: bf16[2,8,32], index: 5, kind: output, shape index: {}]  }
   0x1   :  { %1066 = sst [smem:[#allocation16_spill]] %s1056_s2 }
   0x2   :  { %10 = vsyncpa [#allocation3], 0 }
   0x3   :  { %12 = vsyncpa [#allocation3 + $0x1], 0 }
   0x4   :  { %13 = vsyncpa [#allocation6], 0 }
   0x5   :  { %15 = vsyncpa [#allocation6 + $0x1], 0 }
   0x6   :  { %16 = vsyncpa [#allocation4], 0 }
   0x7   :  { %18 = vsyncpa [#allocation4 + $0x1], 0  ;;  %s799_s18 = smov 0   ;;  %s801_s19 = smov 0  }
   0x8   :  { %s803_s20 = smov 0   ;;  %s805_s21 = smov 0  }
   0x9   :  { %s807_s22 = smov 0   ;;  %s809_s23 = smov 0  }
   0xa LB: > { %1067 = sst [smem:[#allocation13_spill]] %s759_s22  ;;  %s830_s24 = sadd.s32 4294967295, %s763_s23   ;;  %s763_s23 = sphi %s809_s23, %s24_s23   ;;  %s759_s22 = sphi %s807_s22, %s1089_s22   ;;  %s755_s21 = sphi %s805_s21, %s1088_s21   ;;  %s751_s20 = sphi %s803_s20, %s1092_s20   ;;  %s747_s19 = sphi %s801_s19, %s1091_s19   ;;  %s743_s18 = sphi %s799_s18, %s1090_s18  }
   0xb   : > { %s486_s25 = sadd.s32 4294967294, %s763_s23   ;;  %p58_p0 = scmp.ne.s32.totalorder %s747_s19, %s743_s18 }
   0xc   : > { %p1060_p1 = scmp.eq.s32.totalorder %s830_s24, 0  ;;  %p186_p3 = scmp.eq.s32.totalorder %s486_s25, 1 }
   0xd   : > { %p487_p5 = scmp.ge.s32.totalorder %s763_s23, 1  ;;  %p193_p7 = scmp.lt.s32.totalorder %s763_s23, 3 }
   0xe   : > { %p839_p4 = por %p1060_p1, %p58_p0  ;;  %p844_p6 = por %p186_p3, %p58_p0 }
   0xf   : > { %p849_p8 = pnand %p487_p5, %p193_p7  ;;  %s765_s29 = smov [#allocation7]  }
  0x10   : > { %s1068_s26 = scalar_select %p839_p4, 1, 0 }
  0x11   : > { %s1069_s27 = scalar_select %p844_p6, 1, 0 }
  0x12   : > { %s1070_s28 = scalar_select %p849_p8, 1, 0 }
  0x13   : > { %s208_s30 = sshll.u32 %s765_s29, 4  ;;  %p515_p10 = pneg %p849_p8  ;;  %s209_s30 = int_to_ptr.vmem [resolvable:$true] %s208_s30 }
  0x14   : > { %s36_s7 = sadd.s32 1, %s759_s22  ;;  %s45_s8 = sadd.s32 1, %s751_s20 }
  0x15   : > { %p858_p11 = pnand %p515_p10, %p1060_p1  ;;  %p864_p12 = scmp.ge.s32.totalorder %s36_s7, 2 }
  0x16   : > { %s1073_s2 = sld [smem:[#allocation16_spill]] }
  0x17   : > { %s1072_s9 = scalar_select %p864_p12, 1, 0 }
  0x18   : > { %p587_p0 = pneg %p858_p11 }
  0x1c   : > { %s585_s12 = scalar_lea.hbm %s1073_s2, 128 }
  0x1d   : > { %p586_p13 = scmp.ne.s32.totalorder %s1073_s2, %s585_s12  ;;  %p592_p7 = scmp.lt.u32.totalorder %s585_s12, %s1073_s2 }
  0x1f   : > { %p588_p3 = pnand %p587_p0, %p586_p13 }
  0x21   : > { %p589_p5 = pneg %p588_p3 }
  0x23   : > { %p594_p10 = pnand %p592_p7, %p589_p5 }
  0x25   : > { %597 = shalt.err (!%p594_p10)
}
  0x26   : > { %s598_s17 = scalar_lea.vmem %s209_s30, 128  ;;  %p606_p6 = scmp.lt.s32.totalorder %s209_s30, %s209_s30 }
  0x27   : > { %p599_p9 = scmp.ne.s32.totalorder %s209_s30, %s598_s17  ;;  %p607_p4 = scmp.lt.s32.totalorder %s598_s17, %s598_s17 }
  0x29   : > { %p601_p1 = pnand %p599_p9, %p587_p0  ;;  %p608_p8 = por %p607_p4, %p606_p6 }
  0x2b   : > { %p602_p2 = pneg %p601_p1 }
  0x2d   : > { %p609_p12 = pnand %p608_p8, %p602_p2 }
  0x2f   : > { %612 = shalt.err (!%p609_p12)
}
  0x30   : > { %518 = dma.hbm_to_vmem [thread:$0]  (!%p858_p11), %s1073_s2, 128, %s209_s30, [#allocation6]  }
  0x31   : > { %p1074_p1 = scmp.ne.s32.totalorder %s1072_s9, 0  ;;  %p52_p2 = scmp.ne.s32.totalorder %s751_s20, %s747_s19 }
  0x32   : > { %p53_p4 = scmp.eq.s32.totalorder %s763_s23, 0  ;;  %p531_p6 = scmp.lt.s32.totalorder %s763_s23, 2 }
  0x33   : > { %s1094_s7 = smov (%p1074_p1, %s36_s7), 0  ;;  %p1076_p12 = scmp.eq.s32.totalorder %s830_s24, 1 }
  0x34   : > { %1075 = sst [smem:[#allocation14_spill]] %s1094_s7  ;;  %s40_s6 = ssub.s32 %s759_s22, %s1094_s7 }
  0x35   : > { %p43_p8 = scmp.eq.s32.totalorder %s40_s6, 0  ;;  %p54_p9 = por %p53_p4, %p52_p2 }
  0x36   : > { %p896_p13 = por %p1076_p12, %p52_p2  ;;  %s225_s11 = sand.u32 1, %s751_s20  }
  0x37   : > { %s904_s12 = scalar_select %p43_p8, %s751_s20, %s45_s8  }
  0x38   : > { %s1077_s10 = scalar_select %p896_p13, 1, 0 }
  0x39   : > { %1078 = sst [smem:[#allocation15_spill]] %s904_s12  ;;  %s906_s30 = sshll.u32 %s225_s11, 3 }
  0x3a   : > { %s491_s9 = sshll.u32 %s759_s22, 7  ;;  %s229_s16 = scalar_lea.vmem [#allocation2], %s906_s30 }
  0x3b   : > { %s912_s15 = scalar_lea.hbm %s1054_s0, %s491_s9  ;;  %s237_s17 = sshll.u32 %s229_s16, 4  ;;  %s915_s17 = int_to_ptr.vmem [resolvable:$true] %s237_s17 }
  0x3c   : > { %p917_p11 = pnand %p531_p6, %p54_p9  ;;  %s924_s6 = scalar_lea.hbm %s1055_s1, %s491_s9 }
  0x3d   : > { %s244_s13 = sand.u32 1, %s763_s23   ;;  %s226_s14 = scalar_lea.sflag [#allocation3], %s225_s11 }
  0x3e   : > { %s613_s2 = scalar_lea.hbm %s912_s15, 128  ;;  %p615_p3 = pneg %p917_p11 }
  0x3f   : > { %p614_p0 = scmp.ne.s32.totalorder %s912_s15, %s613_s2  ;;  %s618_s22 = scalar_lea.hbm %s1054_s0, 256 }
  0x40   : > { %p619_p10 = scmp.lt.u32.totalorder %s912_s15, %s1054_s0  ;;  %p620_p1 = scmp.lt.u32.totalorder %s618_s22, %s613_s2 }
  0x41   : > { %p616_p5 = pnand %p615_p3, %p614_p0  ;;  %p622_p4 = scmp.lt.u32.totalorder %s613_s2, %s912_s15 }
  0x42   : > { %p621_p2 = por %p620_p1, %p619_p10 }
  0x43   : > { %p617_p7 = pneg %p616_p5 }
  0x44   : > { %p623_p6 = por %p622_p4, %p621_p2 }
  0x46   : > { %p624_p8 = pnand %p623_p6, %p617_p7 }
  0x48   : > { %627 = shalt.err (!%p624_p8)
}
  0x49   : > { %s628_s11 = scalar_lea.vmem %s915_s17, 128  ;;  %s766_s7 = smov [#allocation2]  }
  0x4a   : > { %p629_p9 = scmp.ne.s32.totalorder %s915_s17, %s628_s11  ;;  %s633_s9 = sshll.u32 %s766_s7, 4  ;;  %s634_s9 = int_to_ptr.vmem [resolvable:$false] %s633_s9 }
  0x4b   : > { %s635_s12 = scalar_lea.vmem %s634_s9, 256  ;;  %p636_p5 = scmp.lt.s32.totalorder %s915_s17, %s634_s9 }
  0x4c   : > { %p631_p12 = pnand %p629_p9, %p615_p3  ;;  %p637_p10 = scmp.lt.s32.totalorder %s635_s12, %s628_s11 }
  0x4e   : > { %p632_p0 = pneg %p631_p12  ;;  %p638_p1 = por %p637_p10, %p636_p5 }
  0x50   : > { %p639_p2 = pnand %p638_p1, %p632_p0 }
  0x52   : > { %642 = shalt.err (!%p639_p2)
}
  0x53   : > { %522 = dma.hbm_to_vmem [thread:$0]  (!%p917_p11), %s912_s15, 128, %s915_s17, %s226_s14  }
  0x54   : > { %s248_s2 = scalar_lea.vmem [#allocation5], %s906_s30  ;;  %s245_s29 = scalar_lea.sflag [#allocation6], %s244_s13 }
  0x55   : > { %s256_s22 = sshll.u32 %s248_s2, 4  ;;  %s643_s16 = scalar_lea.hbm %s924_s6, 128  ;;  %s257_s22 = int_to_ptr.vmem [resolvable:$true] %s256_s22 }
  0x56   : > { %p644_p7 = scmp.ne.s32.totalorder %s924_s6, %s643_s16  ;;  %s648_s7 = scalar_lea.hbm %s1055_s1, 256 }
  0x57   : > { %p649_p8 = scmp.lt.u32.totalorder %s924_s6, %s1055_s1  ;;  %p650_p9 = scmp.lt.u32.totalorder %s648_s7, %s643_s16 }
  0x58   : > { %p646_p4 = pnand %p644_p7, %p615_p3  ;;  %p652_p0 = scmp.lt.u32.totalorder %s643_s16, %s924_s6 }
  0x59   : > { %p651_p12 = por %p650_p9, %p649_p8 }
  0x5a   : > { %p647_p6 = pneg %p646_p4 }
  0x5b   : > { %p653_p5 = por %p652_p0, %p651_p12 }
  0x5d   : > { %p654_p10 = pnand %p653_p5, %p647_p6 }
  0x5f   : > { %657 = shalt.err (!%p654_p10)
}
  0x60   : > { %s658_s30 = scalar_lea.vmem %s257_s22, 128  ;;  %s767_s15 = smov [#allocation5]  }
  0x61   : > { %p659_p1 = scmp.ne.s32.totalorder %s257_s22, %s658_s30  ;;  %s663_s17 = sshll.u32 %s767_s15, 4  ;;  %s664_s17 = int_to_ptr.vmem [resolvable:$false] %s663_s17 }
  0x62   : > { %s665_s13 = scalar_lea.vmem %s664_s17, 256  ;;  %p666_p4 = scmp.lt.s32.totalorder %s257_s22, %s664_s17 }
  0x63   : > { %p661_p2 = pnand %p659_p1, %p615_p3  ;;  %p667_p13 = scmp.lt.s32.totalorder %s665_s13, %s658_s30 }
  0x65   : > { %p662_p7 = pneg %p661_p2  ;;  %p668_p8 = por %p667_p13, %p666_p4 }
  0x67   : > { %p669_p9 = pnand %p668_p8, %p662_p7 }
  0x69   : > { %672 = shalt.err (!%p669_p9)
}
  0x6a   : > { %525 = dma.hbm_to_vmem [thread:$0]  (!%p917_p11), %s924_s6, 128, %s257_s22, %s245_s29  }
  0x6b   : > { %p1080_p6 = scmp.ne.s32.totalorder %s1070_s28, 0 }
  0x6c   : > { %s977_s14 = sand.u32 (!%p1080_p6), 1, %s747_s19   ;;  %p1081_p3 = scmp.ne.s32.totalorder (!%p1080_p6), %s1068_s26, 0 }
  0x6d   : > { %265 = sbr.rel (%p1080_p6) target bundleno = 457 (0x1c9), region = 40  ;;  %s495_s2 = sshll.u32 (!%p1080_p6), %s977_s14, 3 }
  0x6e   : > { %s268_s16 = scalar_lea.sflag (!%p1080_p6), [#allocation3], %s977_s14  ;;  %s271_s25 = scalar_lea.vmem (!%p1080_p6), [#allocation2], %s495_s2 }
  0x74   : > { %726 = dma.done.wait (%p1081_p3), %s268_s16, 128  }
  0x75   : > { %728 = vsyncadd (%p1081_p3), %s268_s16, 4294967168  ;;  %s276_s8 = sand.u32 1, %s830_s24   ;;  %s280_s28 = scalar_lea.vmem [#allocation5], %s495_s2 }
  0x76   : > { %s277_s6 = scalar_lea.sflag [#allocation6], %s276_s8 }
  0x77   : > { %730 = dma.done.wait (%p1081_p3), %s277_s6, 128  }
  0x78   : > { %732 = vsyncadd (%p1081_p3), %s277_s6, 4294967168  ;;  %p1082_p13 = scmp.eq.s32.totalorder %s830_s24, 0 }
  0x7a   : > { %734 = dma.done.wait (%p1082_p13), [#allocation6], 128   ;;  %p1083_p11 = pmov %p1082_p13 }
  0x7b   : > { %v316_v0 = vld [vmem:[%s271_s25] sm:$0xff]  ;;  %v317_v1 = vld [vmem:[%s280_s28] sm:$0xff]  ;;  %vm321_vm0 = vcmask 261120   ;;  %s498_s24 = sshll.u32 %s977_s14, 2  ;;  %s502_s7 = sshll.u32 %s755_s21, 6  ;;  %vm353_vm1 = vcmask 257024  }
  0x7c   : > { %736 = vsyncadd (%p1083_p11), [#allocation6], 4294967168  ;;  %v319_v2 = vld [vmem:[#allocation7] sm:$0xff]  ;;  %v318_v3 = vadd.f32 %v317_v1, %v316_v0  ;;  %s315_s9 = scalar_lea.vmem [#allocation8], %s498_s24  ;;  %s1005_s17 = scalar_lea.hbm %s1059_s5, %s502_s7 }
  0x7d   : > { %v499_v15 = vld [vmem:[%s1057_s3] ss:$0 sm:$0xff]  ;;  %s370_s12 = sshll.u32 %s315_s9, 4  ;;  %s356_s13 = scalar_lea.sflag [#allocation4], %s977_s14  ;;  %s1007_s12 = int_to_ptr.vmem [resolvable:$true] %s370_s12 }
  0x7e   : > { %v320_v4 = vadd.f32 %v319_v2, %v318_v3  ;;  %v500_v17 = vld [vmem:[%s1058_s4] ss:$0 sm:$0xff]  ;;  %s673_s2 = scalar_lea.vmem %s1007_s12, 64  ;;  %p1084_p0 = scmp.ne.s32.totalorder %s1077_s10, 0 }
  0x7f   : > { %p674_p12 = scmp.ne.s32.totalorder %s1007_s12, %s673_s2  ;;  %s768_s21 = smov [#allocation8]  }
  0x80   : > { %v322_v5 = vsel %vm321_vm0, %v320_v4, 0.0  ;;  %s677_s16 = sshll.u32 %s768_s21, 4  ;;  %s678_s16 = int_to_ptr.vmem [resolvable:$false] %s677_s16 }
  0x81   : > { %323 = vadd.xlane.f32.xlu0 %v322_v5  ;;  %p675_p5 = pnand %p674_p12, %p1084_p0  ;;  %s679_s25 = scalar_lea.vmem %s678_s16, 128 }
  0x82   : > { %p680_p1 = scmp.lt.s32.totalorder %s1007_s12, %s678_s16  ;;  %p681_p2 = scmp.lt.s32.totalorder %s679_s25, %s673_s2 }
  0x83   : > { %p676_p10 = pneg %p675_p5 }
  0x84   : > { %p682_p7 = por %p681_p2, %p680_p1 }
  0x86   : > { %p683_p4 = pnand %p682_p7, %p676_p10 }
 0x10e   : > { %v324_v6 = vpop.xlane.xlu0 %323 }
 0x10f   : > { %v326_v7 = vmul.f32 0.03125, %v324_v6 }
 0x111   : > { %v327_v8 = vsub.f32 %v320_v4, %v326_v7 }
 0x113   : > { %v328_v9 = vmul.f32 %v327_v8, %v327_v8 }
 0x115   : > { %v329_v10 = vsel %vm321_vm0, %v328_v9, 0.0 }
 0x116   : > { %330 = vadd.xlane.f32.xlu0 %v329_v10 }
 0x1a3   : > { %v331_v11 = vpop.xlane.xlu0 %330 }
 0x1a4   : > { %v332_v12 = vmul.f32 0.03125, %v331_v11 }
 0x1a6   : > { %v333_v13 = vadd.f32 1e-12, %v332_v12 }
 0x1a8   : > { %583 = vrsqrt.f32 %v333_v13 }
 0x1b2   : > { %v584_v14 = vpop.eup %583 }
 0x1b3   : > { %v335_v16 = vmul.f32 %v584_v14, %v327_v8 }
 0x1b5   : > { %v343_v18 = vmul.f32 %v499_v15, %v335_v16 }
 0x1b7   : > { %v351_v19 = vadd.f32 %v500_v17, %v343_v18 }
 0x1b9   : > { %v352_v20 = vpack.c.bf16 %v351_v19, %v351_v19 }
 0x1bb   : > { %354 = vst.msk [vmem:[%s315_s9] sm:$0xf] %vm353_vm1, %v352_v20 }
 0x1bc   : > { %686 = shalt.err (!%p683_p4)
}
 0x1bd   : > { %s687_s14 = scalar_lea.hbm %s1005_s17, 64  ;;  %s691_s28 = scalar_lea.hbm %s1059_s5, 128 }
 0x1be   : > { %p688_p8 = scmp.ne.s32.totalorder %s1005_s17, %s687_s14  ;;  %p692_p3 = scmp.lt.u32.totalorder %s1005_s17, %s1059_s5 }
 0x1bf   : > { %p693_p13 = scmp.lt.u32.totalorder %s691_s28, %s687_s14  ;;  %p695_p12 = scmp.lt.u32.totalorder %s687_s14, %s1005_s17 }
 0x1c0   : > { %p689_p9 = pnand %p688_p8, %p1084_p0 }
 0x1c1   : > { %p694_p11 = por %p693_p13, %p692_p3 }
 0x1c2   : > { %p690_p6 = pneg %p689_p9 }
 0x1c3   : > { %p696_p5 = por %p695_p12, %p694_p11 }
 0x1c5   : > { %p697_p10 = pnand %p696_p5, %p690_p6 }
 0x1c7   : > { %700 = shalt.err (!%p697_p10)
}
 0x1c8   : > { %513 = dma.vmem_to_hbm [thread:$0]  (%p1084_p0), %s1007_s12, 64, %s1005_s17, %s356_s13  }
 0x1c9 PF: > { %s382_s22 = sand.u32 1, %s743_s18   ;;  %p1085_p1 = scmp.ne.s32.totalorder %s1069_s27, 0 }
 0x1ca   : > { %p1086_p2 = scmp.ge.s32.totalorder %s763_s23, 2  ;;  %s383_s29 = scalar_lea.sflag [#allocation4], %s382_s22 }
 0x1cc   : > { %p527_p7 = pnand %p1086_p2, %p1085_p1 }
 0x1ce   : > { %738 = dma.done.wait (!%p527_p7), %s383_s29, 64  }
 0x1cf   : > { %740 = vsyncadd (!%p527_p7), %s383_s29, 4294967232  ;;  %s24_s23 = sadd.s32 1, %s763_s23   ;;  %s1087_s10 = sld [smem:[#allocation15_spill]] }
 0x1d0   : > { %p21_p4 = scmp.ge.s32.totalorder %s24_s23, 4   ;;  %s1088_s21 = sld [smem:[#allocation13_spill]] }
 0x1d1   : > { %s1089_s22 = sld [smem:[#allocation14_spill]]  ;;  %s1090_s18 = smov %s747_s19 }
 0x1d2   : > { %s1091_s19 = smov %s751_s20  ;;  %23 = sbr.rel (!%p21_p4) target bundleno = 10 (0xa), region = 103 }
 0x1d5   : > { %s1092_s20 = smov %s1087_s10 }
 0x1d9   :  { %388 = vsyncpa [#allocation3], 1 }
 0x1da   :  { %390 = vsyncpa [#allocation3 + $0x1], 1 }
 0x1db   :  { %391 = vsyncpa [#allocation6], 1 }
 0x1dc   :  { %393 = vsyncpa [#allocation6 + $0x1], 1 }
 0x1dd   :  { %394 = vsyncpa [#allocation4], 1 }
 0x1de   :  { %396 = vsyncpa [#allocation4 + $0x1], 1 }

</bundles_post_ra>
